<compile_context>
chip_gen: v7x
topology: tpu7x:2x2x1
jax: 0.10.0
libtpu: 0.0.40
codegen_flags: <defaults>
</compile_context>

<pallas_src>
import jax
import jax.numpy as jnp
from jax.experimental import pallas as pl
from jax.experimental.pallas import tpu as pltpu


def _chomp_copy_kernel(x_ref, o_ref):
    # Input and output block shapes match -> plain lane-dense VMEM copy.
    o_ref[...] = x_ref[...]


def _cdiv(a: int, b: int) -> int:
    return -(-a // b)


def _round_up(v: int, m: int) -> int:
    return ((v + m - 1) // m) * m


_TARGET_BLOCK_BYTES = 8 * 1024 * 1024   # per-buffer tile budget (time tile is dtype-scaled)
_MAX_ROW_TILE = 512                     # multiple of 8/16/32 sublanes


def chomp(x: jax.Array, s: int) -> jax.Array:
    """Pallas TPU implementation of Chomp: x[:, :, :-s]."""
    assert s > 0, "s must be positive (matches PyTorch x[:, :, :-s] semantics)"
    B, C, L = x.shape
    L_out = L - s
    assert L_out > 0, "chomp would remove the entire time axis"

    # Tiny time axis: sub-128-lane output blocks would hit masked partial-store
    # penalties and a standalone kernel launch costs more than the copy itself.
    if L_out < 128:
        return x[:, :, :L_out]

    R = B * C
    xf = x.reshape(R, L)                      # contiguous leading-dim merge (free)
    itemsize = jnp.dtype(x.dtype).itemsize

    # Row tile: full extent if it fits, else 512.
    TR = R if R <= _MAX_ROW_TILE else _MAX_ROW_TILE

    # Time tile: lane-dense, ~_TARGET_BLOCK_BYTES per buffer (dtype-scaled),
    # balanced across steps so the trailing ragged tile is never nearly empty.
    tl_cap = max(128, (_TARGET_BLOCK_BYTES // (TR * itemsize)) // 128 * 128)
    tl_cap = min(tl_cap, _round_up(L_out, 128))
    n_steps = _cdiv(L_out, tl_cap)
    TL = min(tl_cap, _round_up(_cdiv(L_out, n_steps), 128))

    grid_r = _cdiv(R, TR)
    grid_l = _cdiv(L_out, TL)

    # v7x has 2 TensorCores: guarantee >= 2 grid blocks when the tensor is big
    # enough, so the "parallel" axes can actually be sharded across cores.
    if grid_r * grid_l == 1:
        if L_out >= 256:
            TL = _round_up(_cdiv(L_out, 2), 128)
            grid_l = _cdiv(L_out, TL)
        elif R >= 16:
            TR = _round_up(_cdiv(R, 2), 8)
            grid_r = _cdiv(R, TR)

    block = (TR, TL)
    block_bytes = TR * TL * itemsize
    # Double-buffered input + output, plus headroom; <= ~34 MiB, fits all chips.
    vmem_limit = max(20 * 1024 * 1024, 4 * block_bytes + 2 * 1024 * 1024)

    out = pl.pallas_call(
        _chomp_copy_kernel,
        out_shape=jax.ShapeDtypeStruct((R, L_out), x.dtype),
        grid_spec=pltpu.PrefetchScalarGridSpec(
            num_scalar_prefetch=0,
            grid=(grid_r, grid_l),
            in_specs=[pl.BlockSpec(block, lambda r, l: (r, l))],
            out_specs=pl.BlockSpec(block, lambda r, l: (r, l)),
        ),
        compiler_params=pltpu.CompilerParams(
            dimension_semantics=("parallel", "parallel"),
            vmem_limit_bytes=int(vmem_limit),
        ),
        cost_estimate=pl.CostEstimate(
            flops=0,
            transcendentals=0,
            bytes_accessed=int(2 * R * L_out * itemsize),
        ),
    )(xf)
    return out.reshape(B, C, L_out)


if __name__ == "__main__":
    key = jax.random.PRNGKey(0)

    # 1) Module's nominal small shape (B=2, C=4, L=16): tiny-time fast path
    #    (XLA slice, per perf review — Pallas is skipped when L_out < 128).
    s = 3
    x = jax.random.normal(key, (2, 4, 16), dtype=jnp.float32)
    y = jax.block_until_ready(chomp(x, s))
    assert y.shape == (2, 4, 13), y.shape
    assert y.dtype == x.dtype
    assert jnp.array_equal(y, x[:, :, :-s]), "mismatch vs reference (tiny path)"

    # 2) Larger f32 case exercising the Pallas tiled path: ragged trailing time
    #    tile (L_out = 993 not a multiple of 128) and the >=2-block split.
    s2 = 7
    x2 = jax.random.normal(jax.random.PRNGKey(1), (2, 24, 1000), dtype=jnp.float32)
    y2 = jax.block_until_ready(chomp(x2, s2))
    assert y2.shape == (2, 24, 993), y2.shape
    assert jnp.array_equal(y2, x2[:, :, :-s2]), "mismatch vs reference (tiled f32)"

    # 3) bf16 case: exercises dtype-scaled (byte-sized) tile selection.
    s3 = 40
    x3 = jax.random.normal(jax.random.PRNGKey(2), (4, 8, 2600), dtype=jnp.bfloat16)
    y3 = jax.block_until_ready(chomp(x3, s3))
    assert y3.shape == (4, 8, 2560), y3.shape
    assert jnp.array_equal(y3, x3[:, :, :-s3]), "mismatch vs reference (tiled bf16)"

    print("KERNEL_OK")
</pallas_src>

<mosaic_0001>
module attributes {stable_mosaic.version = 11 : i64} {
  func.func @_chomp_copy_kernel(%arg0: i32, %arg1: i32, %arg2: memref<48x512xf32, #tpu.memory_space<vmem>>, %arg3: memref<48x512xf32, #tpu.memory_space<vmem>>) attributes {dimension_semantics = [#tpu.dimension_semantics<parallel>, #tpu.dimension_semantics<parallel>], iteration_bounds = array<i64: 1, 2>, scalar_prefetch = 0 : i64, scratch_operands = 0 : i64, tpu.core_type = #tpu.core_type<tc>, window_params = [{transform_indices = @transform_0, window_bounds = array<i64: 48, 512>}, {transform_indices = @transform_1, window_bounds = array<i64: 48, 512>}]} {
    %c0 = arith.constant 0 : index
    %c0_0 = arith.constant 0 : index
    %0 = vector.load %arg2[%c0, %c0_0] : memref<48x512xf32, #tpu.memory_space<vmem>>, vector<48x512xf32>
    %c0_1 = arith.constant 0 : index
    %c0_2 = arith.constant 0 : index
    %1 = vector.load %arg3[%c0_1, %c0_2] : memref<48x512xf32, #tpu.memory_space<vmem>>, vector<48x512xf32>
    tpu.vector_store %arg3[%c0_1, %c0_2], %0 {strides = array<i32>} : memref<48x512xf32, #tpu.memory_space<vmem>>, vector<48x512xf32>,
    return
  }
  func.func @transform_0(%arg0: i32, %arg1: i32) -> (i32, i32) {
    %c0_i32 = arith.constant 0 : i32
    return %arg0, %arg1 : i32, i32
  }
  func.func @transform_1(%arg0: i32, %arg1: i32) -> (i32, i32) {
    %c0_i32 = arith.constant 0 : i32
    return %arg0, %arg1 : i32, i32
  }
}

</mosaic_0001>

<bundles_post_ra>
// kernel: tpu_custom_call.1
= control target key start
LH: loop header
LB: loop body
LE: loop exit
PB: predicated region body
PF: predicated region fallthrough
CT: control target
= control target key end

     0   :  { %6 = vsyncpa [#allocation3], 0  ;;  %s751_s0 = inlined_call_operand.hbm [shape: f32[48,1000], index: 0, kind: input, shape index: {}]   ;;  %s752_s1 = inlined_call_operand.hbm [shape: f32[48,993], index: 1, kind: output, shape index: {}]  }
   0x1   :  { %8 = vsyncpa [#allocation3 + $0x1], 0 }
   0x2   :  { %9 = vsyncpa [#allocation4], 0 }
   0x3   :  { %11 = vsyncpa [#allocation4 + $0x1], 0  ;;  %s525_s6 = smov 0   ;;  %s527_s7 = smov 0  }
   0x4   :  { %s529_s8 = smov 0   ;;  %s531_s9 = smov 0  }
   0x5   :  { %s533_s10 = smov 0   ;;  %s535_s11 = smov 0  }
   0x6 LB: > { %s310_s12 = sadd.s32 4294967295, %s505_s11   ;;  %s311_s13 = sadd.s32 4294967294, %s505_s11   ;;  %s505_s11 = sphi %s535_s11, %s17_s11   ;;  %s501_s10 = sphi %s533_s10, %s766_s10   ;;  %s497_s9 = sphi %s531_s9, %s765_s9   ;;  %s493_s8 = sphi %s529_s8, %s764_s8   ;;  %s489_s7 = sphi %s527_s7, %s763_s7   ;;  %s485_s6 = sphi %s525_s6, %s762_s6  }
   0x7   : > { %s26_s14 = sadd.s32 1, %s501_s10  ;;  %s38_s15 = sadd.s32 1, %s493_s8 }
   0x8   : > { %p27_p0 = scmp.ge.s32.totalorder %s26_s14, 2  ;;  %p45_p1 = scmp.ne.s32.totalorder %s493_s8, %s489_s7 }
   0x9   : > { %p46_p2 = scmp.eq.s32.totalorder %s505_s11, 0  ;;  %p51_p3 = scmp.ne.s32.totalorder %s489_s7, %s485_s6 }
   0xa   : > { %s768_s14 = smov (%p27_p0, %s26_s14), 0  ;;  %p52_p5 = scmp.eq.s32.totalorder %s310_s12, 0 }
   0xb   : > { %p566_p4 = por %p46_p2, %p45_p1  ;;  %s34_s17 = ssub.s32 %s501_s10, %s768_s14 }
   0xc   : > { %p77_p6 = scmp.eq.s32.totalorder %s310_s12, 1  ;;  %p36_p7 = scmp.eq.s32.totalorder %s34_s17, 0 }
   0xd   : > { %p572_p8 = por %p52_p5, %p51_p3  ;;  %p83_p10 = scmp.eq.s32.totalorder %s311_s13, 1 }
   0xe   : > { %p576_p9 = por %p77_p6, %p45_p1  ;;  %p337_p13 = scmp.lt.s32.totalorder %s505_s11, 2 }
   0xf   : > { %s581_s20 = scalar_select %p36_p7, %s493_s8, %s38_s15  }
  0x10   : > { %s756_s19 = scalar_select %p576_p9, 1, 0 }
  0x11   : > { %p583_p11 = por %p83_p10, %p51_p3  ;;  %s103_s22 = sand.u32 1, %s493_s8  }
  0x12   : > { %s323_s23 = smul.u32 192, %s103_s22  ;;  %s321_s24 = sshll.u32 %s501_s10, 9 }
  0x13   : > { %s757_s21 = scalar_select %p583_p11, 1, 0 }
  0x14   : > { %p593_p0 = pnand %p337_p13, %p566_p4  ;;  %s600_s28 = scalar_lea.hbm %s751_s0, %s321_s24 }
  0x15   : > { %s107_s29 = scalar_lea.vmem [#allocation2], %s323_s23  ;;  %s604_s2 = scalar_lea.sflag [#allocation3], %s103_s22 }
  0x16   : > { %s117_s30 = sshll.u32 %s107_s29, 4  ;;  %s393_s3 = scalar_lea.hbm %s600_s28, 3072  ;;  %s602_s30 = int_to_ptr.vmem [resolvable:$true] %s117_s30 }
  0x17   : > { %p394_p1 = scmp.ne.s32.totalorder %s600_s28, %s393_s3  ;;  %p395_p2 = pneg %p593_p0 }
  0x18   : > { %s398_s12 = scalar_lea.hbm %s751_s0, 6144  ;;  %p399_p5 = scmp.lt.u32.totalorder %s600_s28, %s751_s0 }
  0x19   : > { %p396_p3 = pnand %p395_p2, %p394_p1  ;;  %p400_p6 = scmp.lt.u32.totalorder %s398_s12, %s393_s3 }
  0x1a   : > { %p402_p10 = scmp.lt.u32.totalorder %s393_s3, %s600_s28 }
  0x1b   : > { %p397_p4 = pneg %p396_p3  ;;  %p401_p7 = por %p400_p6, %p399_p5 }
  0x1d   : > { %p403_p13 = por %p402_p10, %p401_p7 }
  0x1f   : > { %p404_p12 = pnand %p403_p13, %p397_p4 }
  0x21   : > { %407 = shalt.err (!%p404_p12)
}
  0x22   : > { %s408_s16 = scalar_lea.vmem %s602_s30, 3072  ;;  %s507_s17 = smov [#allocation2]  }
  0x23   : > { %p409_p1 = scmp.ne.s32.totalorder %s602_s30, %s408_s16  ;;  %s413_s22 = sshll.u32 %s507_s17, 4  ;;  %s414_s22 = int_to_ptr.vmem [resolvable:$false] %s413_s22 }
  0x24   : > { %s415_s23 = scalar_lea.vmem %s414_s22, 6144  ;;  %p416_p9 = scmp.lt.s32.totalorder %s602_s30, %s414_s22 }
  0x25   : > { %p411_p3 = pnand %p409_p1, %p395_p2  ;;  %p417_p5 = scmp.lt.s32.totalorder %s415_s23, %s408_s16 }
  0x27   : > { %p412_p11 = pneg %p411_p3  ;;  %p418_p6 = por %p417_p5, %p416_p9 }
  0x29   : > { %p419_p7 = pnand %p418_p6, %p412_p11 }
  0x2b   : > { %422 = shalt.err (!%p419_p7)
}
  0x2c   : > { %s508_s24 = smov 1024   ;;  %s509_s26 = smov 512  }
  0x2d   : > { %s510_s27 = smov 32   ;;  %p316_p12 = scmp.ge.s32.totalorder %s505_s11, 1 }
  0x2e   : > { %332 = dma.hbm_to_vmem [thread:$0]  (!%p593_p0), %s600_s28, 3072, %s602_s30, %s604_s2, %s508_s24, %s509_s26, %s510_s27  }
  0x2f   : > { %p125_p2 = scmp.lt.s32.totalorder %s505_s11, 3 }
  0x31   : > { %p126_p4 = pnand %p316_p12, %p125_p2 }
  0x32   : > { %s635_s29 = sand.u32 (!%p126_p4), 1, %s489_s7  }
  0x33   : > { %129 = sbr.rel (%p126_p4) target bundleno = 87 (0x57), region = 24  ;;  %s132_s4 = scalar_lea.sflag (!%p126_p4), [#allocation3], %s635_s29 }
  0x34   : > { %s324_s3 = smul.u32 (!%p126_p4), 192, %s635_s29 }
  0x36   : > { %s639_s5 = scalar_lea.vmem (!%p126_p4), [#allocation2], %s324_s3 }
  0x3a   : > { %476 = dma.done.wait (%p572_p8), %s132_s4, 3072  }
  0x3b   : > { %478 = vsyncadd (%p572_p8), %s132_s4, 4294964224  ;;  %v158_v0 = vld [vmem:[%s639_s5] sm:$0xff]  ;;  %v159_v1 = vld [vmem:[%s639_s5 + $0x8] sm:$0xff]  ;;  %s648_s25 = scalar_lea.vmem [#allocation5], %s324_s3  ;;  %s322_s18 = sshll.u32 %s497_s9, 9 }
  0x3c   : > { %v160_v2 = vld [vmem:[%s639_s5 + $0x10] sm:$0xff]  ;;  %182 = vst [vmem:[%s648_s25] sm:$0xff] %v158_v0  ;;  %183 = vst [vmem:[%s648_s25 + $0x8] sm:$0xff] %v159_v1  ;;  %v161_v3 = vld [vmem:[%s639_s5 + $0x18] sm:$0xff]  ;;  %s223_s28 = sshll.u32 %s648_s25, 4  ;;  %s679_s2 = scalar_lea.hbm %s752_s1, %s322_s18  ;;  %s687_s28 = int_to_ptr.vmem [resolvable:$true] %s223_s28 }
  0x3d   : > { %184 = vst [vmem:[%s648_s25 + $0x10] sm:$0xff] %v160_v2  ;;  %v162_v4 = vld [vmem:[%s639_s5 + $0x20] sm:$0xff]  ;;  %v163_v5 = vld [vmem:[%s639_s5 + $0x28] sm:$0xff]  ;;  %185 = vst [vmem:[%s648_s25 + $0x18] sm:$0xff] %v161_v3  ;;  %s207_s12 = scalar_lea.sflag [#allocation4], %s635_s29  ;;  %s423_s13 = scalar_lea.vmem %s687_s28, 3072 }
  0x3e   : > { %186 = vst [vmem:[%s648_s25 + $0x20] sm:$0xff] %v162_v4  ;;  %187 = vst [vmem:[%s648_s25 + $0x28] sm:$0xff] %v163_v5  ;;  %v164_v6 = vld [vmem:[%s639_s5 + $0x30] sm:$0xff]  ;;  %v165_v7 = vld [vmem:[%s639_s5 + $0x38] sm:$0xff]  ;;  %p424_p8 = scmp.ne.s32.totalorder %s687_s28, %s423_s13  ;;  %p759_p9 = scmp.ne.s32.totalorder %s756_s19, 0 }
  0x3f   : > { %v166_v8 = vld [vmem:[%s639_s5 + $0x40] sm:$0xff]  ;;  %188 = vst [vmem:[%s648_s25 + $0x30] sm:$0xff] %v164_v6  ;;  %189 = vst [vmem:[%s648_s25 + $0x38] sm:$0xff] %v165_v7  ;;  %v167_v9 = vld [vmem:[%s639_s5 + $0x48] sm:$0xff]  ;;  %s511_s15 = smov [#allocation5]  }
  0x40   : > { %190 = vst [vmem:[%s648_s25 + $0x40] sm:$0xff] %v166_v8  ;;  %v168_v10 = vld [vmem:[%s639_s5 + $0x50] sm:$0xff]  ;;  %v169_v11 = vld [vmem:[%s639_s5 + $0x58] sm:$0xff]  ;;  %191 = vst [vmem:[%s648_s25 + $0x48] sm:$0xff] %v167_v9  ;;  %p425_p11 = pnand %p424_p8, %p759_p9  ;;  %s427_s16 = sshll.u32 %s511_s15, 4  ;;  %s428_s16 = int_to_ptr.vmem [resolvable:$false] %s427_s16 }
  0x41   : > { %192 = vst [vmem:[%s648_s25 + $0x50] sm:$0xff] %v168_v10  ;;  %193 = vst [vmem:[%s648_s25 + $0x58] sm:$0xff] %v169_v11  ;;  %v170_v12 = vld [vmem:[%s639_s5 + $0x60] sm:$0xff]  ;;  %v171_v13 = vld [vmem:[%s639_s5 + $0x68] sm:$0xff]  ;;  %s429_s17 = scalar_lea.vmem %s428_s16, 6144  ;;  %p430_p10 = scmp.lt.s32.totalorder %s687_s28, %s428_s16 }
  0x42   : > { %v172_v14 = vld [vmem:[%s639_s5 + $0x70] sm:$0xff]  ;;  %194 = vst [vmem:[%s648_s25 + $0x60] sm:$0xff] %v170_v12  ;;  %195 = vst [vmem:[%s648_s25 + $0x68] sm:$0xff] %v171_v13  ;;  %v173_v15 = vld [vmem:[%s639_s5 + $0x78] sm:$0xff]  ;;  %p426_p0 = pneg %p425_p11  ;;  %p431_p13 = scmp.lt.s32.totalorder %s429_s17, %s423_s13 }
  0x43   : > { %196 = vst [vmem:[%s648_s25 + $0x70] sm:$0xff] %v172_v14  ;;  %v174_v16 = vld [vmem:[%s639_s5 + $0x80] sm:$0xff]  ;;  %v175_v17 = vld [vmem:[%s639_s5 + $0x88] sm:$0xff]  ;;  %197 = vst [vmem:[%s648_s25 + $0x78] sm:$0xff] %v173_v15 }
  0x44   : > { %198 = vst [vmem:[%s648_s25 + $0x80] sm:$0xff] %v174_v16  ;;  %199 = vst [vmem:[%s648_s25 + $0x88] sm:$0xff] %v175_v17  ;;  %v176_v18 = vld [vmem:[%s639_s5 + $0x90] sm:$0xff]  ;;  %v177_v19 = vld [vmem:[%s639_s5 + $0x98] sm:$0xff]  ;;  %p432_p1 = por %p431_p13, %p430_p10 }
  0x45   : > { %v178_v20 = vld [vmem:[%s639_s5 + $0xa0] sm:$0xff]  ;;  %200 = vst [vmem:[%s648_s25 + $0x90] sm:$0xff] %v176_v18  ;;  %201 = vst [vmem:[%s648_s25 + $0x98] sm:$0xff] %v177_v19  ;;  %v179_v21 = vld [vmem:[%s639_s5 + $0xa8] sm:$0xff] }
  0x46   : > { %202 = vst [vmem:[%s648_s25 + $0xa0] sm:$0xff] %v178_v20  ;;  %v180_v22 = vld [vmem:[%s639_s5 + $0xb0] sm:$0xff]  ;;  %v181_v23 = vld [vmem:[%s639_s5 + $0xb8] sm:$0xff]  ;;  %203 = vst [vmem:[%s648_s25 + $0xa8] sm:$0xff] %v179_v21  ;;  %p433_p3 = pnand %p432_p1, %p426_p0 }
  0x47   : > { %204 = vst [vmem:[%s648_s25 + $0xb0] sm:$0xff] %v180_v22  ;;  %205 = vst [vmem:[%s648_s25 + $0xb8] sm:$0xff] %v181_v23 }
  0x48   : > { %436 = shalt.err (!%p433_p3)
}
  0x49   : > { %s437_s22 = scalar_lea.hbm %s679_s2, 3072  ;;  %s441_s26 = scalar_lea.hbm %s752_s1, 6144 }
  0x4a   : > { %p438_p5 = scmp.ne.s32.totalorder %s679_s2, %s437_s22  ;;  %p442_p12 = scmp.lt.u32.totalorder %s679_s2, %s752_s1 }
  0x4b   : > { %p443_p2 = scmp.lt.u32.totalorder %s441_s26, %s437_s22  ;;  %p445_p8 = scmp.lt.u32.totalorder %s437_s22, %s679_s2 }
  0x4c   : > { %p439_p6 = pnand %p438_p5, %p759_p9 }
  0x4d   : > { %p444_p4 = por %p443_p2, %p442_p12 }
  0x4e   : > { %p440_p7 = pneg %p439_p6 }
  0x4f   : > { %p446_p11 = por %p445_p8, %p444_p4 }
  0x51   : > { %p447_p0 = pnand %p446_p11, %p440_p7 }
  0x53   : > { %450 = shalt.err (!%p447_p0)
}
  0x54   : > { %s512_s4 = smov 512   ;;  %s513_s5 = smov 1024  }
  0x55   : > { %s514_s25 = smov 32  }
  0x56   : > { %327 = dma.vmem_to_hbm [thread:$0]  (%p759_p9), %s687_s28, 3072, %s679_s2, %s207_s12, %s512_s4, %s513_s5, %s514_s25  }
  0x57 PF: > { %s238_s18 = sand.u32 1, %s485_s6   ;;  %p760_p10 = scmp.ne.s32.totalorder %s757_s21, 0 }
  0x58   : > { %p761_p13 = scmp.ge.s32.totalorder %s505_s11, 2  ;;  %s239_s9 = scalar_lea.sflag [#allocation4], %s238_s18 }
  0x5a   : > { %p334_p1 = pnand %p761_p13, %p760_p10 }
  0x5c   : > { %480 = dma.done.wait (!%p334_p1), %s239_s9, 3072  }
  0x5d   : > { %482 = vsyncadd (!%p334_p1), %s239_s9, 4294964224  ;;  %s17_s11 = sadd.s32 1, %s505_s11   ;;  %s762_s6 = smov %s489_s7 }
  0x5e   : > { %p14_p3 = scmp.ge.s32.totalorder %s17_s11, 4   ;;  %s763_s7 = smov %s493_s8 }
  0x5f   : > { %s764_s8 = smov %s581_s20  ;;  %s765_s9 = smov %s501_s10 }
  0x60   : > { %s766_s10 = smov %s768_s14  ;;  %16 = sbr.rel (!%p14_p3) target bundleno = 6 (0x6), region = 69 }
  0x67   :  { %244 = vsyncpa [#allocation3], 1 }
  0x68   :  { %246 = vsyncpa [#allocation3 + $0x1], 1 }
  0x69   :  { %247 = vsyncpa [#allocation4], 1 }
  0x6a   :  { %249 = vsyncpa [#allocation4 + $0x1], 1 }

</bundles_post_ra>
